<compile_context>
chip_gen: v7x
topology: tpu7x:2x2x1
jax: 0.10.0
libtpu: 0.0.40
codegen_flags: <defaults>
</compile_context>

<pallas_src>
import jax
import jax.numpy as jnp
from jax.experimental import pallas as pl
from jax.experimental.pallas import tpu as pltpu


def _round_up(x: int, m: int) -> int:
    return ((x + m - 1) // m) * m


def _qvalue_kernel(state_ref, w1_ref, b1_ref, w2_ref, b2_ref, out_ref):
    # Hot path: two MXU matmuls + f32 bias/ReLU epilogue, fully fused.
    # All bf16 casts happen here (not in the wrapper) so HBM sees a single
    # f32 read of the state stream.
    x = state_ref[...].astype(jnp.bfloat16)                          # (Bt, S)
    w1 = w1_ref[...].astype(jnp.bfloat16)                            # (S, 128)
    h = jnp.dot(x, w1, preferred_element_type=jnp.float32)           # (Bt, 128) f32
    h = jnp.maximum(h + b1_ref[...], 0.0)                            # bias + ReLU (f32, VPU)
    w2 = w2_ref[...].astype(jnp.bfloat16)                            # (128, A)
    y = jnp.dot(h.astype(jnp.bfloat16), w2,                          # bf16 pack -> MXU
                preferred_element_type=jnp.float32)                  # (Bt, A) f32
    out_ref[...] = (y + b2_ref[...]).astype(out_ref.dtype)


def qvalue_forward(state, w1, b1, w2, b2, *, block_b=8192):
    """state: (B, S) f32; w1: (S,128); b1: (1,128); w2: (128,A); b2: (1,A).

    Returns (B, A) float32 Q-values (y = relu(x @ W1 + b1) @ W2 + b2, i.e.
    PyTorch Linear with weights stored pre-transposed as (in, out)).

    block_b is the per-grid-step row tile.  Guidance: ~8K rows fits the 32 MiB
    scoped VMEM default everywhere (v5e/v6e/v7x); v6e can go to 16K-32K, keep
    <= ~16K on v7x (64 MiB physical VMEM).
    """
    B, S = state.shape
    H = w1.shape[1]
    A = w2.shape[1]

    # Row tile: multiple of 8 (f32 sublane granularity), never larger than the
    # batch rounded up to 8.  The ragged tail is handled by the cdiv grid.
    block_b = _round_up(max(8, min(int(block_b), _round_up(B, 8))), 8)

    # Megacore: if the batch is large, prefer >= 2 grid steps so "parallel"
    # batch tiles can shard across v7x's two TensorCores.
    if B >= 4096 and pl.cdiv(B, block_b) < 2:
        block_b = _round_up(pl.cdiv(B, 2), 8)

    grid = (pl.cdiv(B, block_b),)

    # VMEM budget: state and output tiles are lane-padded to 128 f32 lanes and
    # double-buffered -> ~2 KiB per batch row; weights/biases are < 0.2 MiB.
    tile_vmem = 2 * 2 * block_b * 128 * 4
    vmem_limit = min(max(32 * 1024 * 1024, tile_vmem + (2 << 20)),
                     96 * 1024 * 1024)

    b1f = b1.astype(jnp.float32)
    b2f = b2.astype(jnp.float32)

    return pl.pallas_call(
        _qvalue_kernel,
        out_shape=jax.ShapeDtypeStruct((B, A), jnp.float32),
        grid_spec=pltpu.PrefetchScalarGridSpec(
            num_scalar_prefetch=0,
            grid=grid,
            in_specs=[
                pl.BlockSpec((block_b, S), lambda i: (i, 0)),   # state tile (pipelined)
                pl.BlockSpec((S, H), lambda i: (0, 0)),         # W1 (resident)
                pl.BlockSpec((1, H), lambda i: (0, 0)),         # b1
                pl.BlockSpec((H, A), lambda i: (0, 0)),         # W2 (resident)
                pl.BlockSpec((1, A), lambda i: (0, 0)),         # b2
            ],
            out_specs=pl.BlockSpec((block_b, A), lambda i: (i, 0)),
        ),
        compiler_params=pltpu.CompilerParams(
            dimension_semantics=("parallel",),   # batch tiles are independent
            vmem_limit_bytes=vmem_limit,
        ),
    )(state, w1, b1f, w2, b2f)


def init_params(key, state_size, action_size, hidden=128):
    """Deterministic init mimicking torch.nn.Linear default (uniform +/- 1/sqrt(fan_in)).
    Weights stored transposed: (in_features, out_features)."""
    k1, k2, k3, k4 = jax.random.split(key, 4)
    lim1 = 1.0 / jnp.sqrt(state_size)
    lim2 = 1.0 / jnp.sqrt(hidden)
    w1 = jax.random.uniform(k1, (state_size, hidden), jnp.float32, -lim1, lim1)
    b1 = jax.random.uniform(k2, (1, hidden), jnp.float32, -lim1, lim1)
    w2 = jax.random.uniform(k3, (hidden, action_size), jnp.float32, -lim2, lim2)
    b2 = jax.random.uniform(k4, (1, action_size), jnp.float32, -lim2, lim2)
    return w1, b1, w2, b2


if __name__ == "__main__":
    key = jax.random.PRNGKey(0)
    k_param, k_state = jax.random.split(key)

    batch = 2
    state_size = 32
    action_size = 8

    w1, b1, w2, b2 = init_params(k_param, state_size, action_size)
    state = jax.random.normal(k_state, (batch, state_size), jnp.float32)

    q = qvalue_forward(state, w1, b1, w2, b2)
    q = jax.block_until_ready(q)
    assert q.shape == (batch, action_size)

    # Reference 1: same math with the same bf16 casts (tight tolerance).
    xb = state.astype(jnp.bfloat16)
    w1b = w1.astype(jnp.bfloat16)
    w2b = w2.astype(jnp.bfloat16)
    h_ref = jnp.maximum(
        jnp.dot(xb, w1b, preferred_element_type=jnp.float32) + b1, 0.0)
    ref_bf16 = jnp.dot(h_ref.astype(jnp.bfloat16), w2b,
                       preferred_element_type=jnp.float32) + b2
    assert jnp.allclose(q, ref_bf16, atol=1e-4, rtol=1e-4)

    # Reference 2: full f32 math (PyTorch-equivalent), loose tolerance for bf16 matmuls.
    ref_f32 = jnp.maximum(state @ w1 + b1, 0.0) @ w2 + b2
    assert jnp.allclose(q, ref_f32, atol=5e-2, rtol=5e-2)

    print("KERNEL_OK")
</pallas_src>

<mosaic_0001>
module attributes {stable_mosaic.version = 11 : i64} {
  func.func @_qvalue_kernel(%arg0: i32, %arg1: memref<8x32xf32, #tpu.memory_space<vmem>>, %arg2: memref<32x128xf32, #tpu.memory_space<vmem>>, %arg3: memref<1x128xf32, #tpu.memory_space<vmem>>, %arg4: memref<128x8xf32, #tpu.memory_space<vmem>>, %arg5: memref<1x8xf32, #tpu.memory_space<vmem>>, %arg6: memref<8x8xf32, #tpu.memory_space<vmem>>) attributes {dimension_semantics = [#tpu.dimension_semantics<parallel>], iteration_bounds = array<i64: 1>, scalar_prefetch = 0 : i64, scratch_operands = 0 : i64, tpu.core_type = #tpu.core_type<tc>, window_params = [{transform_indices = @transform_0, window_bounds = array<i64: 8, 32>}, {pipeline_mode = #tpu.pipeline_mode<synchronous>, transform_indices = @transform_1, window_bounds = array<i64: 32, 128>}, {pipeline_mode = #tpu.pipeline_mode<synchronous>, transform_indices = @transform_2, window_bounds = array<i64: 1, 128>}, {pipeline_mode = #tpu.pipeline_mode<synchronous>, transform_indices = @transform_3, window_bounds = array<i64: 128, 8>}, {pipeline_mode = #tpu.pipeline_mode<synchronous>, transform_indices = @transform_4, window_bounds = array<i64: 1, 8>}, {transform_indices = @transform_5, window_bounds = array<i64: 8, 8>}]} {
    %c0 = arith.constant 0 : index
    %c0_0 = arith.constant 0 : index
    %0 = vector.load %arg1[%c0, %c0_0] : memref<8x32xf32, #tpu.memory_space<vmem>>, vector<8x32xf32>
    %1 = arith.truncf %0 : vector<8x32xf32> to vector<8x32xbf16>
    %c0_1 = arith.constant 0 : index
    %c0_2 = arith.constant 0 : index
    %2 = vector.load %arg2[%c0_1, %c0_2] : memref<32x128xf32, #tpu.memory_space<vmem>>, vector<32x128xf32>
    %3 = arith.truncf %2 : vector<32x128xf32> to vector<32x128xbf16>
    %cst = arith.constant dense<0.000000e+00> : vector<8x128xf32>
    %4 = tpu.matmul %1, %3, %cst {dimension_numbers = #tpu.dot_dimension_numbers<[1], [0], [0], [1], [0, 0, 1, 1], [], []>} : vector<8x32xbf16>, vector<32x128xbf16>, vector<8x128xf32> -> vector<8x128xf32>
    %c0_3 = arith.constant 0 : index
    %c0_4 = arith.constant 0 : index
    %5 = vector.load %arg3[%c0_3, %c0_4] : memref<1x128xf32, #tpu.memory_space<vmem>>, vector<1x128xf32>
    %6 = vector.broadcast %5 : vector<1x128xf32> to vector<8x128xf32>
    %7 = arith.addf %4, %6 : vector<8x128xf32>
    %cst_5 = arith.constant 0.000000e+00 : f32
    %8 = vector.broadcast %cst_5 : f32 to vector<8x128xf32>
    %9 = arith.maximumf %7, %8 : vector<8x128xf32>
    %c0_6 = arith.constant 0 : index
    %c0_7 = arith.constant 0 : index
    %10 = vector.load %arg4[%c0_6, %c0_7] : memref<128x8xf32, #tpu.memory_space<vmem>>, vector<128x8xf32>
    %11 = arith.truncf %10 : vector<128x8xf32> to vector<128x8xbf16>
    %12 = arith.truncf %9 : vector<8x128xf32> to vector<8x128xbf16>
    %cst_8 = arith.constant dense<0.000000e+00> : vector<8x8xf32>
    %13 = tpu.matmul %12, %11, %cst_8 {dimension_numbers = #tpu.dot_dimension_numbers<[1], [0], [0], [1], [0, 0, 1, 1], [], []>} : vector<8x128xbf16>, vector<128x8xbf16>, vector<8x8xf32> -> vector<8x8xf32>
    %c0_9 = arith.constant 0 : index
    %c0_10 = arith.constant 0 : index
    %14 = vector.load %arg5[%c0_9, %c0_10] : memref<1x8xf32, #tpu.memory_space<vmem>>, vector<1x8xf32>
    %15 = vector.broadcast %14 : vector<1x8xf32> to vector<8x8xf32>
    %16 = arith.addf %13, %15 : vector<8x8xf32>
    %c0_11 = arith.constant 0 : index
    %c0_12 = arith.constant 0 : index
    %17 = vector.load %arg6[%c0_11, %c0_12] : memref<8x8xf32, #tpu.memory_space<vmem>>, vector<8x8xf32>
    tpu.vector_store %arg6[%c0_11, %c0_12], %16 {strides = array<i32>} : memref<8x8xf32, #tpu.memory_space<vmem>>, vector<8x8xf32>,
    return
  }
  func.func @transform_0(%arg0: i32) -> (i32, i32) {
    %c0_i32 = arith.constant 0 : i32
    %c0_i32_0 = arith.constant 0 : i32
    return %arg0, %c0_i32 : i32, i32
  }
  func.func @transform_1(%arg0: i32) -> (i32, i32) {
    %c0_i32 = arith.constant 0 : i32
    %c0_i32_0 = arith.constant 0 : i32
    %c0_i32_1 = arith.constant 0 : i32
    return %c0_i32, %c0_i32_0 : i32, i32
  }
  func.func @transform_2(%arg0: i32) -> (i32, i32) {
    %c0_i32 = arith.constant 0 : i32
    %c0_i32_0 = arith.constant 0 : i32
    %c0_i32_1 = arith.constant 0 : i32
    return %c0_i32, %c0_i32_0 : i32, i32
  }
  func.func @transform_3(%arg0: i32) -> (i32, i32) {
    %c0_i32 = arith.constant 0 : i32
    %c0_i32_0 = arith.constant 0 : i32
    %c0_i32_1 = arith.constant 0 : i32
    return %c0_i32, %c0_i32_0 : i32, i32
  }
  func.func @transform_4(%arg0: i32) -> (i32, i32) {
    %c0_i32 = arith.constant 0 : i32
    %c0_i32_0 = arith.constant 0 : i32
    %c0_i32_1 = arith.constant 0 : i32
    return %c0_i32, %c0_i32_0 : i32, i32
  }
  func.func @transform_5(%arg0: i32) -> (i32, i32) {
    %c0_i32 = arith.constant 0 : i32
    %c0_i32_0 = arith.constant 0 : i32
    return %arg0, %c0_i32 : i32, i32
  }
}

</mosaic_0001>

<bundles_post_ra>
// kernel: tpu_custom_call.1
= control target key start
LH: loop header
LB: loop body
LE: loop exit
PB: predicated region body
PF: predicated region fallthrough
CT: control target
= control target key end

     0   :  { %10 = vsyncpa [#allocation3], 0  ;;  %v244_v2 = vmov 0.0   ;;  %vm245_vm0 = vmmov 0   ;;  %vm37_vm1 = vcmask 261120   ;;  %vm154_vm2 = vcmask 64512   ;;  %s360_s0 = inlined_call_operand.vmem [shape: f32[2,32], index: 0, kind: input, shape index: {}]   ;;  %s361_s1 = inlined_call_operand.vmem [shape: f32[32,128], index: 1, kind: input, shape index: {}]   ;;  %s362_s2 = inlined_call_operand.vmem [shape: f32[1,128], index: 2, kind: input, shape index: {}]   ;;  %s363_s3 = inlined_call_operand.vmem [shape: f32[128,8], index: 3, kind: input, shape index: {}]   ;;  %s364_s4 = inlined_call_operand.vmem [shape: f32[1,8], index: 4, kind: input, shape index: {}]   ;;  %s365_s5 = inlined_call_operand.hbm [shape: f32[2,8], index: 5, kind: output, shape index: {}]  }
   0x1   :  { %v24_v0 = vld [vmem:[%s361_s1] sm:$0xff]  ;;  %v25_v1 = vld [vmem:[%s361_s1 + $0x8] sm:$0xff]  ;;  %187 = vmatprep.subr.bf16.mxu0 %v244_v2  ;;  %v26_v4 = vld [vmem:[%s361_s1 + $0x10] sm:$0xff]  ;;  %191 = vmatprep.mubr.msk.bf16.mxu0 %vm245_vm0, %v244_v2 }
   0x2   :  { %v28_v3 = vpack.c.bf16 %v25_v1, %v24_v0  ;;  %v27_v5 = vld [vmem:[%s361_s1 + $0x18] sm:$0xff]  ;;  %195 = vmatprep.subr.bf16.mxu1 %v244_v2  ;;  %v82_v6 = vld [vmem:[%s363_s3] sm:$0xff]  ;;  %v83_v7 = vld [vmem:[%s363_s3 + $0x8] sm:$0xff]  ;;  %211 = vmatprep.mubr.msk.bf16.mxu1 %vm245_vm0, %v244_v2 }
   0x3   :  { %v84_v8 = vld [vmem:[%s363_s3 + $0x10] sm:$0xff]  ;;  %v29_v9 = vpack.c.bf16 %v27_v5, %v26_v4  ;;  %v22_v10 = vld [vmem:[%s360_s0] sm:$0xff]  ;;  %v98_v11 = vpack.c.bf16 %v83_v7, %v82_v6  ;;  %v85_v12 = vld [vmem:[%s363_s3 + $0x18] sm:$0xff] }
   0x4   :  { %188 = vmatpush3.bf16.msra.mxu0 %v28_v3  ;;  %v99_v13 = vpack.c.bf16 %v85_v12, %v84_v8  ;;  %v23_v14 = vpack.c.bf16 %v22_v10, %v22_v10  ;;  %v86_v15 = vld [vmem:[%s363_s3 + $0x20] sm:$0xff]  ;;  %v87_v16 = vld [vmem:[%s363_s3 + $0x28] sm:$0xff]  ;;  %v88_v18 = vld [vmem:[%s363_s3 + $0x30] sm:$0xff] }
   0x5   :  { %189 = vmatprep.subr.bf16.mxu0 %v244_v2  ;;  %196 = vmatpush3.bf16.msra.mxu1 %v98_v11  ;;  %v100_v17 = vpack.c.bf16 %v87_v16, %v86_v15  ;;  %v89_v19 = vld [vmem:[%s363_s3 + $0x38] sm:$0xff]  ;;  %v90_v21 = vld [vmem:[%s363_s3 + $0x40] sm:$0xff]  ;;  %v91_v22 = vld [vmem:[%s363_s3 + $0x48] sm:$0xff] }
   0x6   :  { %197 = vmatprep.subr.bf16.mxu1 %v244_v2  ;;  %v101_v20 = vpack.c.bf16 %v89_v19, %v88_v18  ;;  %v102_v23 = vpack.c.bf16 %v91_v22, %v90_v21  ;;  %v92_v24 = vld [vmem:[%s363_s3 + $0x50] sm:$0xff]  ;;  %v93_v25 = vld [vmem:[%s363_s3 + $0x58] sm:$0xff]  ;;  %v94_v27 = vld [vmem:[%s363_s3 + $0x60] sm:$0xff] }
   0x7   :  { %v103_v26 = vpack.c.bf16 %v93_v25, %v92_v24  ;;  %v95_v28 = vld [vmem:[%s363_s3 + $0x68] sm:$0xff]  ;;  %v96_v30 = vld [vmem:[%s363_s3 + $0x70] sm:$0xff]  ;;  %v97_v31 = vld [vmem:[%s363_s3 + $0x78] sm:$0xff] }
   0x8   :  { %190 = vmatpush3.bf16.msra.mxu0 %v29_v9  ;;  %v104_v29 = vpack.c.bf16 %v95_v28, %v94_v27  ;;  %v105_v32 = vpack.c.bf16 %v97_v31, %v96_v30  ;;  %v172_v33 = vld [vmem:[%s362_s2] ss:$0 sm:$0xff] }
   0x9   :  { %198 = vmatpush3.bf16.msra.mxu1 %v99_v13  ;;  %v174_v41 = vld [vmem:[%s364_s4] ss:$0 sm:$0xff] }
   0xa   :  { %199 = vmatprep.subr.bf16.mxu1 %v244_v2 }
   0xb   :  { %192 = vmatmul.mubr.msk.bf16.vlgmr.msra.gmra.mrb[0].mxu0 %vm37_vm1, %v23_v14 }
   0xd   :  { %200 = vmatpush3.bf16.msra.mxu1 %v100_v17 }
   0xe   :  { %201 = vmatprep.subr.bf16.mxu1 %v244_v2 }
  0x11   :  { %202 = vmatpush3.bf16.msra.mxu1 %v101_v20 }
  0x12   :  { %203 = vmatprep.subr.bf16.mxu1 %v244_v2 }
  0x15   :  { %204 = vmatpush3.bf16.msra.mxu1 %v102_v23 }
  0x16   :  { %205 = vmatprep.subr.bf16.mxu1 %v244_v2 }
  0x19   :  { %206 = vmatpush3.bf16.msra.mxu1 %v103_v26 }
  0x1a   :  { %207 = vmatprep.subr.bf16.mxu1 %v244_v2 }
  0x1d   :  { %208 = vmatpush3.bf16.msra.mxu1 %v104_v29 }
  0x1e   :  { %209 = vmatprep.subr.bf16.mxu1 %v244_v2 }
  0x21   :  { %210 = vmatpush3.bf16.msra.mxu1 %v105_v32 }
  0xde   :  { %v75_v34 = vpop.f32.mrb[0].mxu0 }
  0xdf   :  { %v76_v35 = vadd.f32 %v172_v33, %v75_v34  ;;  %v193_v36 = vpop.f32.mrb[1].mxu0 }
  0xe0   :  { %v78_v37 = vpop.f32.mrb[2].mxu0 }
  0xe1   :  { %v81_v38 = vmax.f32 %v76_v35, 0.0  ;;  %v194_v39 = vpop.f32.mrb[3].mxu0 }
  0xe3   :  { %v106_v40 = vpack.c.bf16 %v81_v38, %v81_v38 }
  0xe5   :  { %212 = vmatmul.mubr.bf16.vlgmr.msra.gmra.mrb[0].mxu1 %v106_v40 }
 0x1b8   :  { %v148_v42 = vpop.f32.mrb[0].mxu1 }
 0x1b9   :  { %v149_v43 = vadd.f32 %v174_v41, %v148_v42  ;;  %v213_v44 = vpop.f32.mrb[1].mxu1 }
 0x1ba   :  { %v151_v45 = vpop.f32.mrb[2].mxu1 }
 0x1bb   :  { %155 = vst.msk [vmem:[#allocation2] sm:$0xff] %vm154_vm2, %v149_v43  ;;  %v214_v46 = vpop.f32.mrb[3].mxu1 }
 0x1bc   :  { %160 = vsyncadd [#allocation3], 96  ;;  %s246_s2 = smov [#allocation2]  }
 0x1bd   :  { %s161_s3 = sshll.u32 %s246_s2, 4  ;;  %s162_s3 = int_to_ptr.vmem [resolvable:$true] %s161_s3 }
 0x1be   :  { %s220_s11 = scalar_lea.vmem %s162_s3, 32  ;;  %s224_s12 = scalar_lea.vmem %s162_s3, 128 }
 0x1bf   :  { %p221_p0 = scmp.ne.s32.totalorder %s162_s3, %s220_s11  ;;  %p225_p1 = scmp.lt.s32.totalorder %s162_s3, %s162_s3 }
 0x1c0   :  { %p226_p2 = scmp.lt.s32.totalorder %s224_s12, %s220_s11 }
 0x1c2   :  { %p227_p3 = por %p226_p2, %p225_p1 }
 0x1c4   :  { %p228_p4 = pnand %p227_p3, %p221_p0 }
 0x1c6   :  { %231 = shalt.err (!%p228_p4)
}
 0x1c7   :  { %s232_s0 = scalar_lea.hbm %s365_s5, 32 }
 0x1c8   :  { %p233_p5 = scmp.ne.s32.totalorder %s365_s5, %s232_s0  ;;  %p236_p6 = scmp.lt.u32.totalorder %s232_s0, %s365_s5 }
 0x1ca   :  { %p238_p7 = pnand %p236_p6, %p233_p5 }
 0x1cc   :  { %241 = shalt.err (!%p238_p7)
}
 0x1cd   :  { %s247_s18 = smov 32   ;;  %s248_s19 = smov 2  }
 0x1ce   :  { %167 = dma.vmem_to_hbm [thread:$0]  %s162_s3, 32, %s365_s5, [#allocation3], %s247_s18, %s247_s18, %s248_s19  }
 0x1cf   :  { %242 = dma.done.wait [#allocation3], 128  }
 0x1d0   :  { %243 = vsyncadd [#allocation3], 4294967168 }
 0x1d1   :  { %171 = vsyncpa [#allocation3], 1 }

</bundles_post_ra>
